<compile_context>
chip_gen: v5e
topology: v5e:2x2
jax: 0.10.0
libtpu: 0.0.40
codegen_flags: <defaults>
</compile_context>

<pallas_src>
import functools

import jax
import jax.numpy as jnp
from jax.experimental import pallas as pl
from jax.experimental.pallas import tpu as pltpu


def _attend_kernel(x_ref, w1_ref, b1_ref, w2_ref, b2_ref,
                   beta_ref, alpha_ref, *, La, Lb):
    Bblk, R, D = x_ref.shape          # R = La + Lb
    H = w1_ref.shape[1]

    w1 = w1_ref[...]                  # (D, H) bf16
    b1 = b1_ref[...]                  # (1, H) f32
    w2 = w2_ref[...]                  # (H, H) bf16
    b2 = b2_ref[...]                  # (1, H) f32

    # --- fused MLP f() over the concatenated A|B rows ------------------------
    # mlp(num_inputs, num_hiddens, flatten=False); Dropout == identity.
    # bf16 MXU inputs, f32 accumulation; bias adds / ReLU stay f32.
    x2 = x_ref[...].reshape(Bblk * R, D)                       # bf16
    h = jnp.dot(x2, w1, preferred_element_type=jnp.float32) + b1
    h = jnp.maximum(h, 0.0)
    h = jnp.dot(h.astype(jnp.bfloat16), w2,
                preferred_element_type=jnp.float32) + b2
    f_all = jnp.maximum(h, 0.0).reshape(Bblk, R, H)            # f32

    # Slice the f32 activations (sublane-aligned), cast MXU operands to bf16.
    fa = f_all[:, :La, :].astype(jnp.bfloat16)                 # (Bblk, La, H)
    fb = f_all[:, La:, :].astype(jnp.bfloat16)                 # (Bblk, Lb, H)

    # Raw A / B rows (already bf16) for the value matmuls.
    a3 = x_ref[:, pl.ds(0, La), :]                             # (Bblk, La, D)
    b3 = x_ref[:, pl.ds(La, Lb), :]                            # (Bblk, Lb, D)

    # --- scores (MXU-native rhs-transposed einsums, no XLU transpose) --------
    e = jnp.einsum('blh,bmh->blm', fa, fb,
                   preferred_element_type=jnp.float32)         # (Bblk, La, Lb)
    # TODO(synk): duplicated score einsum (see header) — fine at these shapes.
    e_t = jnp.einsum('bmh,blh->bml', fb, fa,
                     preferred_element_type=jnp.float32)       # (Bblk, Lb, La)

    # Row softmax(e) @ B  ->  beta
    p = jnp.exp(e - jnp.max(e, axis=-1, keepdims=True))
    p = p * pl.reciprocal(jnp.sum(p, axis=-1, keepdims=True), approx=True)
    beta = jnp.einsum('blm,bmd->bld', p.astype(jnp.bfloat16), b3,
                      preferred_element_type=jnp.float32)      # (Bblk, La, D)

    # Row softmax(e^T) @ A  ->  alpha
    q = jnp.exp(e_t - jnp.max(e_t, axis=-1, keepdims=True))
    q = q * pl.reciprocal(jnp.sum(q, axis=-1, keepdims=True), approx=True)
    alpha = jnp.einsum('bml,bld->bmd', q.astype(jnp.bfloat16), a3,
                       preferred_element_type=jnp.float32)     # (Bblk, Lb, D)

    # Lane-dense stores: flatten (La,D)/(Lb,D) onto the lane axis (multiples
    # of 128 lanes) so the writes are full-width vst's, not masked 32-lane
    # stores.  TODO(synk): confirm on a bundle dump that the repack stays
    # amortized once Bblk grows (it does at the default picker settings).
    beta_ref[0] = beta.reshape(Bblk, La * D).astype(beta_ref.dtype)
    alpha_ref[0] = alpha.reshape(Bblk, Lb * D).astype(alpha_ref.dtype)


_VMEM_WORK_BUDGET = 24 * 1024 * 1024    # conservative: fits v5e/v6e/v7x
_VMEM_LIMIT_BYTES = 48 * 1024 * 1024    # above scoped defaults, < v7x physical


def _pick_batch_block(batch, La, Lb, D, H):
    """Batch elements per grid step.

    Targets ~512 fused MLP rows per step (amortizes ~0.35us per-step overhead
    and fills the MXU sublanes), bounded by an explicit VMEM working-set
    budget, and capped so the grid keeps >= 2 steps when batch >= 2 (v7x has
    two TensorCores; dimension_semantics=('parallel',) only helps if G >= 2).
    """
    R = La + Lb
    # Per-batch-element VMEM bytes live during one grid step:
    per_elem = (
        4 * R * D            # bf16 X block, double-buffered
        + 8 * R * D          # f32 beta/alpha output blocks, double-buffered
        + 6 * R * H          # f_all (f32) + fa/fb (bf16)
        + 20 * La * Lb       # e, e_t, p, q (f32) + bf16 probability copies
        + 4 * R * D          # f32 beta/alpha before the store cast
    )
    max_by_vmem = max(1, _VMEM_WORK_BUDGET // max(per_elem, 1))
    target = max(1, pl.cdiv(512, R))          # >= ~512 fused MLP rows / step
    bblk = min(batch, int(max_by_vmem), target)
    if batch >= 2:
        bblk = min(bblk, pl.cdiv(batch, 2))   # keep G >= 2 for v7x megacore
    return max(1, int(bblk))


def attend(A, B, w1, b1, w2, b2):
    """A: (batch, La, D), B: (batch, Lb, D). Returns (beta, alpha)."""
    batch, La, D = A.shape
    _, Lb, _ = B.shape
    H = w1.shape[1]
    R = La + Lb
    out_dtype = A.dtype

    # bf16 at the call boundary (halves DMA bytes); biases stay f32.  A and B
    # are packed into one (batch, La+Lb, D) operand so the MLP runs once per
    # grid step over the fused row block.
    X = jnp.concatenate(
        [A.astype(jnp.bfloat16), B.astype(jnp.bfloat16)], axis=1)
    w1_bf = w1.astype(jnp.bfloat16)
    w2_bf = w2.astype(jnp.bfloat16)
    b1_2d = b1.reshape(1, H).astype(jnp.float32)
    b2_2d = b2.reshape(1, H).astype(jnp.float32)

    Bblk = _pick_batch_block(batch, La, Lb, D, H)
    G = pl.cdiv(batch, Bblk)
    padded = G * Bblk
    if padded != batch:                       # pad instead of forcing Bblk=1
        X = jnp.pad(X, ((0, padded - batch), (0, 0), (0, 0)))

    # Advisory cost estimate for the XLA scheduler (per-operand itemsizes).
    rows_total = padded * R
    flops = (2 * rows_total * D * H + 2 * rows_total * H * H   # fused MLP
             + 4 * padded * La * Lb * H                        # e and e^T
             + 4 * padded * La * Lb * D)                       # beta + alpha
    out_isz = jnp.dtype(out_dtype).itemsize
    bytes_accessed = (2 * X.size                               # bf16 input
                      + 2 * (w1_bf.size + w2_bf.size)          # bf16 weights
                      + 4 * (b1_2d.size + b2_2d.size)          # f32 biases
                      + out_isz * padded * R * D)              # outputs
    cost = pl.CostEstimate(flops=flops,
                           transcendentals=2 * padded * La * Lb,
                           bytes_accessed=bytes_accessed)

    grid_spec = pltpu.PrefetchScalarGridSpec(
        num_scalar_prefetch=0,
        grid=(G,),
        in_specs=[
            pl.BlockSpec((Bblk, R, D), lambda g: (g, 0, 0)),
            # Weight/bias blocks: constant index_map, never re-fetched.
            pl.BlockSpec((D, H), lambda g: (0, 0)),
            pl.BlockSpec((1, H), lambda g: (0, 0)),
            pl.BlockSpec((H, H), lambda g: (0, 0)),
            pl.BlockSpec((1, H), lambda g: (0, 0)),
        ],
        out_specs=[
            pl.BlockSpec((1, Bblk, La * D), lambda g: (g, 0, 0)),
            pl.BlockSpec((1, Bblk, Lb * D), lambda g: (g, 0, 0)),
        ],
    )

    beta_flat, alpha_flat = pl.pallas_call(
        functools.partial(_attend_kernel, La=La, Lb=Lb),
        out_shape=(
            jax.ShapeDtypeStruct((G, Bblk, La * D), out_dtype),
            jax.ShapeDtypeStruct((G, Bblk, Lb * D), out_dtype),
        ),
        grid_spec=grid_spec,
        cost_estimate=cost,
        compiler_params=pltpu.CompilerParams(
            dimension_semantics=("parallel",),
            vmem_limit_bytes=_VMEM_LIMIT_BYTES),
    )(X, w1_bf, b1_2d, w2_bf, b2_2d)

    beta = beta_flat.reshape(padded, La, D)[:batch]
    alpha = alpha_flat.reshape(padded, Lb, D)[:batch]
    return beta, alpha


def attend_reference(A, B, w1, b1, w2, b2):
    def f(x):
        h = jnp.maximum(x @ w1 + b1, 0.0)
        return jnp.maximum(h @ w2 + b2, 0.0)
    f_A = f(A)
    f_B = f(B)
    e = jnp.einsum("bld,bmd->blm", f_A, f_B)
    beta = jnp.einsum("blm,bmd->bld", jax.nn.softmax(e, axis=-1), B)
    alpha = jnp.einsum("bml,bld->bmd",
                       jax.nn.softmax(jnp.swapaxes(e, 1, 2), axis=-1), A)
    return beta, alpha


if __name__ == "__main__":
    batch, La, Lb = 2, 8, 16
    num_inputs, num_hiddens = 32, 32

    key = jax.random.PRNGKey(0)
    k_a, k_b, k_w1, k_b1, k_w2, k_b2 = jax.random.split(key, 6)

    A = jax.random.normal(k_a, (batch, La, num_inputs), dtype=jnp.float32)
    B = jax.random.normal(k_b, (batch, Lb, num_inputs), dtype=jnp.float32)

    # Deterministic parameter init (Linear weights stored as (in, out)).
    w1 = jax.random.normal(k_w1, (num_inputs, num_hiddens), jnp.float32) * 0.1
    b1 = jax.random.normal(k_b1, (num_hiddens,), jnp.float32) * 0.1
    w2 = jax.random.normal(k_w2, (num_hiddens, num_hiddens), jnp.float32) * 0.1
    b2 = jax.random.normal(k_b2, (num_hiddens,), jnp.float32) * 0.1

    beta, alpha = attend(A, B, w1, b1, w2, b2)
    jax.block_until_ready((beta, alpha))

    beta_ref, alpha_ref = attend_reference(A, B, w1, b1, w2, b2)
    assert beta.shape == (batch, La, num_inputs)
    assert alpha.shape == (batch, Lb, num_inputs)
    # bf16 MXU inputs + approx reciprocal -> looser tolerance vs f32 reference.
    assert jnp.allclose(beta, beta_ref, atol=5e-2, rtol=5e-2)
    assert jnp.allclose(alpha, alpha_ref, atol=5e-2, rtol=5e-2)

    print("KERNEL_OK")
</pallas_src>

<mosaic_0001>
module attributes {stable_mosaic.version = 11 : i64} {
  func.func @_attend_kernel(%arg0: i32, %arg1: memref<1x24x32xbf16, #tpu.memory_space<vmem>>, %arg2: memref<32x32xbf16, #tpu.memory_space<vmem>>, %arg3: memref<1x32xf32, #tpu.memory_space<vmem>>, %arg4: memref<32x32xbf16, #tpu.memory_space<vmem>>, %arg5: memref<1x32xf32, #tpu.memory_space<vmem>>, %arg6: memref<1x1x256xf32, #tpu.memory_space<vmem>>, %arg7: memref<1x1x512xf32, #tpu.memory_space<vmem>>) attributes {dimension_semantics = [#tpu.dimension_semantics<parallel>], iteration_bounds = array<i64: 2>, scalar_prefetch = 0 : i64, scratch_operands = 0 : i64, tpu.core_type = #tpu.core_type<tc>, window_params = [{transform_indices = @transform_0, window_bounds = array<i64: 1, 24, 32>}, {pipeline_mode = #tpu.pipeline_mode<synchronous>, transform_indices = @transform_1, window_bounds = array<i64: 32, 32>}, {pipeline_mode = #tpu.pipeline_mode<synchronous>, transform_indices = @transform_2, window_bounds = array<i64: 1, 32>}, {pipeline_mode = #tpu.pipeline_mode<synchronous>, transform_indices = @transform_3, window_bounds = array<i64: 32, 32>}, {pipeline_mode = #tpu.pipeline_mode<synchronous>, transform_indices = @transform_4, window_bounds = array<i64: 1, 32>}, {transform_indices = @transform_5, window_bounds = array<i64: 1, 1, 256>}, {transform_indices = @transform_6, window_bounds = array<i64: 1, 1, 512>}]} {
    %c0 = arith.constant 0 : index
    %c0_0 = arith.constant 0 : index
    %0 = vector.load %arg2[%c0, %c0_0] : memref<32x32xbf16, #tpu.memory_space<vmem>>, vector<32x32xbf16>
    %c0_1 = arith.constant 0 : index
    %c0_2 = arith.constant 0 : index
    %1 = vector.load %arg3[%c0_1, %c0_2] : memref<1x32xf32, #tpu.memory_space<vmem>>, vector<1x32xf32>
    %c0_3 = arith.constant 0 : index
    %c0_4 = arith.constant 0 : index
    %2 = vector.load %arg4[%c0_3, %c0_4] : memref<32x32xbf16, #tpu.memory_space<vmem>>, vector<32x32xbf16>
    %c0_5 = arith.constant 0 : index
    %c0_6 = arith.constant 0 : index
    %3 = vector.load %arg5[%c0_5, %c0_6] : memref<1x32xf32, #tpu.memory_space<vmem>>, vector<1x32xf32>
    %c0_7 = arith.constant 0 : index
    %c0_8 = arith.constant 0 : index
    %c0_9 = arith.constant 0 : index
    %4 = vector.load %arg1[%c0_7, %c0_8, %c0_9] : memref<1x24x32xbf16, #tpu.memory_space<vmem>>, vector<1x24x32xbf16>
    %5 = vector.shape_cast %4 : vector<1x24x32xbf16> to vector<24x32xbf16>
    %cst = arith.constant dense<0.000000e+00> : vector<24x32xf32>
    %6 = tpu.matmul %5, %0, %cst {dimension_numbers = #tpu.dot_dimension_numbers<[1], [0], [0], [1], [0, 0, 1, 1], [], []>} : vector<24x32xbf16>, vector<32x32xbf16>, vector<24x32xf32> -> vector<24x32xf32>
    %7 = vector.broadcast %1 : vector<1x32xf32> to vector<24x32xf32>
    %8 = arith.addf %6, %7 : vector<24x32xf32>
    %cst_10 = arith.constant 0.000000e+00 : f32
    %9 = vector.broadcast %cst_10 : f32 to vector<24x32xf32>
    %10 = arith.maximumf %8, %9 : vector<24x32xf32>
    %11 = arith.truncf %10 : vector<24x32xf32> to vector<24x32xbf16>
    %cst_11 = arith.constant dense<0.000000e+00> : vector<24x32xf32>
    %12 = tpu.matmul %11, %2, %cst_11 {dimension_numbers = #tpu.dot_dimension_numbers<[1], [0], [0], [1], [0, 0, 1, 1], [], []>} : vector<24x32xbf16>, vector<32x32xbf16>, vector<24x32xf32> -> vector<24x32xf32>
    %13 = vector.broadcast %3 : vector<1x32xf32> to vector<24x32xf32>
    %14 = arith.addf %12, %13 : vector<24x32xf32>
    %cst_12 = arith.constant 0.000000e+00 : f32
    %15 = vector.broadcast %cst_12 : f32 to vector<24x32xf32>
    %16 = arith.maximumf %14, %15 : vector<24x32xf32>
    %17 = vector.shape_cast %16 : vector<24x32xf32> to vector<1x24x32xf32>
    %18 = vector.extract_strided_slice %17 {offsets = [0, 0, 0], sizes = [1, 8, 32], strides = [1, 1, 1]} : vector<1x24x32xf32> to vector<1x8x32xf32>
    %19 = arith.truncf %18 : vector<1x8x32xf32> to vector<1x8x32xbf16>
    %20 = vector.extract_strided_slice %17 {offsets = [0, 8, 0], sizes = [1, 16, 32], strides = [1, 1, 1]} : vector<1x24x32xf32> to vector<1x16x32xf32>
    %21 = arith.truncf %20 : vector<1x16x32xf32> to vector<1x16x32xbf16>
    %c0_13 = arith.constant 0 : index
    %c0_14 = arith.constant 0 : index
    %c0_15 = arith.constant 0 : index
    %22 = vector.load %arg1[%c0_13, %c0_14, %c0_15] : memref<1x24x32xbf16, #tpu.memory_space<vmem>>, vector<1x8x32xbf16>
    %c0_16 = arith.constant 0 : index
    %c8 = arith.constant 8 : index
    %c0_17 = arith.constant 0 : index
    %23 = vector.load %arg1[%c0_16, %c8, %c0_17] : memref<1x24x32xbf16, #tpu.memory_space<vmem>>, vector<1x16x32xbf16>
    "tpu.trace_start"() <{level = 10 : i32, message = "blh,bmh->blm"}> : () -> ()
    %cst_18 = arith.constant dense<0.000000e+00> : vector<1x8x16xf32>
    %24 = tpu.matmul %19, %21, %cst_18 {dimension_numbers = #tpu.dot_dimension_numbers<[2], [2], [1], [1], [0, 0, 0, 1, 1, 1], [0], [0]>} : vector<1x8x32xbf16>, vector<1x16x32xbf16>, vector<1x8x16xf32> -> vector<1x8x16xf32>
    "tpu.trace_stop"() : () -> ()
    "tpu.trace_start"() <{level = 10 : i32, message = "bmh,blh->bml"}> : () -> ()
    %cst_19 = arith.constant dense<0.000000e+00> : vector<1x16x8xf32>
    %25 = tpu.matmul %21, %19, %cst_19 {dimension_numbers = #tpu.dot_dimension_numbers<[2], [2], [1], [1], [0, 0, 0, 1, 1, 1], [0], [0]>} : vector<1x16x32xbf16>, vector<1x8x32xbf16>, vector<1x16x8xf32> -> vector<1x16x8xf32>
    "tpu.trace_stop"() : () -> ()
    %cst_20 = arith.constant dense<0xFF800000> : vector<1x8xf32>
    %26 = vector.multi_reduction <maximumf>, %24, %cst_20 [2] : vector<1x8x16xf32> to vector<1x8xf32>
    %27 = vector.shape_cast %26 : vector<1x8xf32> to vector<1x8x1xf32>
    %28 = vector.broadcast %27 : vector<1x8x1xf32> to vector<1x8x16xf32>
    %29 = arith.subf %24, %28 : vector<1x8x16xf32>
    %30 = math.exp %29 : vector<1x8x16xf32>
    %cst_21 = arith.constant dense<0.000000e+00> : vector<1x8xf32>
    %31 = vector.multi_reduction <add>, %30, %cst_21 [2] : vector<1x8x16xf32> to vector<1x8xf32>
    %32 = vector.shape_cast %31 : vector<1x8xf32> to vector<1x8x1xf32>
    %33 = tpu.reciprocal %32 {approx = true} : vector<1x8x1xf32> -> vector<1x8x1xf32>
    %34 = vector.broadcast %33 : vector<1x8x1xf32> to vector<1x8x16xf32>
    %35 = arith.mulf %30, %34 : vector<1x8x16xf32>
    %36 = arith.truncf %35 : vector<1x8x16xf32> to vector<1x8x16xbf16>
    "tpu.trace_start"() <{level = 10 : i32, message = "blm,bmd->bld"}> : () -> ()
    %cst_22 = arith.constant dense<0.000000e+00> : vector<1x8x32xf32>
    %37 = tpu.matmul %36, %23, %cst_22 {dimension_numbers = #tpu.dot_dimension_numbers<[2], [1], [1], [2], [0, 0, 0, 1, 1, 2], [0], [0]>} : vector<1x8x16xbf16>, vector<1x16x32xbf16>, vector<1x8x32xf32> -> vector<1x8x32xf32>
    "tpu.trace_stop"() : () -> ()
    %cst_23 = arith.constant dense<0xFF800000> : vector<1x16xf32>
    %38 = vector.multi_reduction <maximumf>, %25, %cst_23 [2] : vector<1x16x8xf32> to vector<1x16xf32>
    %39 = vector.shape_cast %38 : vector<1x16xf32> to vector<1x16x1xf32>
    %40 = vector.broadcast %39 : vector<1x16x1xf32> to vector<1x16x8xf32>
    %41 = arith.subf %25, %40 : vector<1x16x8xf32>
    %42 = math.exp %41 : vector<1x16x8xf32>
    %cst_24 = arith.constant dense<0.000000e+00> : vector<1x16xf32>
    %43 = vector.multi_reduction <add>, %42, %cst_24 [2] : vector<1x16x8xf32> to vector<1x16xf32>
    %44 = vector.shape_cast %43 : vector<1x16xf32> to vector<1x16x1xf32>
    %45 = tpu.reciprocal %44 {approx = true} : vector<1x16x1xf32> -> vector<1x16x1xf32>
    %46 = vector.broadcast %45 : vector<1x16x1xf32> to vector<1x16x8xf32>
    %47 = arith.mulf %42, %46 : vector<1x16x8xf32>
    %48 = arith.truncf %47 : vector<1x16x8xf32> to vector<1x16x8xbf16>
    "tpu.trace_start"() <{level = 10 : i32, message = "bml,bld->bmd"}> : () -> ()
    %cst_25 = arith.constant dense<0.000000e+00> : vector<1x16x32xf32>
    %49 = tpu.matmul %48, %22, %cst_25 {dimension_numbers = #tpu.dot_dimension_numbers<[2], [1], [1], [2], [0, 0, 0, 1, 1, 2], [0], [0]>} : vector<1x16x8xbf16>, vector<1x8x32xbf16>, vector<1x16x32xf32> -> vector<1x16x32xf32>
    "tpu.trace_stop"() : () -> ()
    %50 = vector.shape_cast %37 : vector<1x8x32xf32> to vector<1x256xf32>
    %c0_26 = arith.constant 0 : index
    %c0_27 = arith.constant 0 : index
    %c0_28 = arith.constant 0 : index
    %51 = vector.load %arg6[%c0_26, %c0_27, %c0_28] : memref<1x1x256xf32, #tpu.memory_space<vmem>>, vector<1x1x256xf32>
    %52 = vector.shape_cast %51 : vector<1x1x256xf32> to vector<1x256xf32>
    %53 = vector.shape_cast %50 : vector<1x256xf32> to vector<1x1x256xf32>
    tpu.vector_store %arg6[%c0_26, %c0_27, %c0_28], %53 {strides = array<i32>} : memref<1x1x256xf32, #tpu.memory_space<vmem>>, vector<1x1x256xf32>,
    %54 = vector.shape_cast %49 : vector<1x16x32xf32> to vector<1x512xf32>
    %c0_29 = arith.constant 0 : index
    %c0_30 = arith.constant 0 : index
    %c0_31 = arith.constant 0 : index
    %55 = vector.load %arg7[%c0_29, %c0_30, %c0_31] : memref<1x1x512xf32, #tpu.memory_space<vmem>>, vector<1x1x512xf32>
    %56 = vector.shape_cast %55 : vector<1x1x512xf32> to vector<1x512xf32>
    %57 = vector.shape_cast %54 : vector<1x512xf32> to vector<1x1x512xf32>
    tpu.vector_store %arg7[%c0_29, %c0_30, %c0_31], %57 {strides = array<i32>} : memref<1x1x512xf32, #tpu.memory_space<vmem>>, vector<1x1x512xf32>,
    return
  }
  func.func @transform_0(%arg0: i32) -> (i32, i32, i32) {
    %c0_i32 = arith.constant 0 : i32
    %c0_i32_0 = arith.constant 0 : i32
    %c0_i32_1 = arith.constant 0 : i32
    return %arg0, %c0_i32, %c0_i32_0 : i32, i32, i32
  }
  func.func @transform_1(%arg0: i32) -> (i32, i32) {
    %c0_i32 = arith.constant 0 : i32
    %c0_i32_0 = arith.constant 0 : i32
    %c0_i32_1 = arith.constant 0 : i32
    return %c0_i32, %c0_i32_0 : i32, i32
  }
  func.func @transform_2(%arg0: i32) -> (i32, i32) {
    %c0_i32 = arith.constant 0 : i32
    %c0_i32_0 = arith.constant 0 : i32
    %c0_i32_1 = arith.constant 0 : i32
    return %c0_i32, %c0_i32_0 : i32, i32
  }
  func.func @transform_3(%arg0: i32) -> (i32, i32) {
    %c0_i32 = arith.constant 0 : i32
    %c0_i32_0 = arith.constant 0 : i32
    %c0_i32_1 = arith.constant 0 : i32
    return %c0_i32, %c0_i32_0 : i32, i32
  }
  func.func @transform_4(%arg0: i32) -> (i32, i32) {
    %c0_i32 = arith.constant 0 : i32
    %c0_i32_0 = arith.constant 0 : i32
    %c0_i32_1 = arith.constant 0 : i32
    return %c0_i32, %c0_i32_0 : i32, i32
  }
  func.func @transform_5(%arg0: i32) -> (i32, i32, i32) {
    %c0_i32 = arith.constant 0 : i32
    %c0_i32_0 = arith.constant 0 : i32
    %c0_i32_1 = arith.constant 0 : i32
    return %arg0, %c0_i32, %c0_i32_0 : i32, i32, i32
  }
  func.func @transform_6(%arg0: i32) -> (i32, i32, i32) {
    %c0_i32 = arith.constant 0 : i32
    %c0_i32_0 = arith.constant 0 : i32
    %c0_i32_1 = arith.constant 0 : i32
    return %arg0, %c0_i32, %c0_i32_0 : i32, i32, i32
  }
}

</mosaic_0001>

<bundles_post_ra>
// kernel: tpu_custom_call.1
= control target key start
LH: loop header
LB: loop body
LE: loop exit
PB: predicated region body
PF: predicated region fallthrough
CT: control target
= control target key end

     0   :  { %s1637_s0 = inlined_call_operand.hbm [shape: bf16[2,24,32], index: 0, kind: input, shape index: {}]   ;;  %s1638_s1 = inlined_call_operand.hbm [shape: bf16[32,32], index: 1, kind: input, shape index: {}]   ;;  %s1639_s2 = inlined_call_operand.vmem [shape: f32[1,32], index: 2, kind: input, shape index: {}]   ;;  %s1640_s3 = inlined_call_operand.hbm [shape: bf16[32,32], index: 3, kind: input, shape index: {}]   ;;  %s1641_s4 = inlined_call_operand.vmem [shape: f32[1,32], index: 4, kind: input, shape index: {}]   ;;  %s1642_s5 = inlined_call_operand.hbm [shape: f32[2,1,256], index: 5, kind: output, shape index: {0}]   ;;  %s1643_s6 = inlined_call_operand.hbm [shape: f32[2,1,512], index: 6, kind: output, shape index: {1}]  }
   0x1   :  { %1646 = sst [smem:[#allocation15_spill]] %s1638_s1 }
   0x2   :  { %1647 = sst [smem:[#allocation16_spill]] %s1640_s3 }
   0x3   :  { %12 = vsyncpa [#allocation3], 0 }
   0x4   :  { %14 = vsyncpa [#allocation3 + $0x1], 0 }
   0x5   :  { %15 = vsyncpa [#allocation6], 0 }
   0x6   :  { %16 = vsyncpa [#allocation4], 0 }
   0x7   :  { %18 = vsyncpa [#allocation4 + $0x1], 0 }
   0x8   :  { %19 = vsyncpa [#allocation10], 0 }
   0x9   :  { %21 = vsyncpa [#allocation10 + $0x1], 0  ;;  %s1323_s21 = smov 0   ;;  %s1325_s22 = smov 0  }
   0xa   :  { %s1327_s23 = smov 0   ;;  %s1329_s24 = smov 0  }
   0xb LB: > { %s1344_s25 = sadd.s32 4294967295, %s1277_s24   ;;  %s940_s26 = sadd.s32 4294967294, %s1277_s24   ;;  %s1277_s24 = sphi %s1329_s24, %s1661_s24   ;;  %s1273_s23 = sphi %s1327_s23, %s1660_s23   ;;  %s1269_s22 = sphi %s1325_s22, %s1659_s22   ;;  %s1265_s21 = sphi %s1323_s21, %s1658_s21  }
   0xc   : > { %p47_p0 = scmp.ne.s32.totalorder %s1269_s22, %s1265_s21  ;;  %p48_p1 = scmp.eq.s32.totalorder %s1344_s25, 0 }
   0xd   : > { %p155_p2 = scmp.eq.s32.totalorder %s1344_s25, 1  ;;  %p161_p3 = scmp.eq.s32.totalorder %s940_s26, 1 }
   0xe   : > { %p1353_p4 = por %p48_p1, %p47_p0  ;;  %p941_p5 = scmp.ge.s32.totalorder %s1277_s24, 1 }
   0xf   : > { %p1358_p6 = por %p161_p3, %p47_p0  ;;  %p194_p7 = scmp.lt.s32.totalorder %s1277_s24, 3 }
  0x10   : > { %s1650_s1 = sld [smem:[#allocation15_spill]]  ;;  %s1279_s9 = smov [#allocation5]  }
  0x11   : > { %p1366_p8 = pnand %p941_p5, %p194_p7  ;;  %s207_s10 = sshll.u32 %s1279_s9, 4  ;;  %s208_s10 = int_to_ptr.vmem [resolvable:$true] %s207_s10 }
  0x12   : > { %s1652_s3 = sld [smem:[#allocation16_spill]]  ;;  %s1644_s14 = smov 64  }
  0x13   : > { %p1006_p9 = pneg %p1366_p8  ;;  %s1645_s15 = smov 4  }
  0x14   : > { %s1282_s16 = smov [#allocation7]   ;;  %s1385_s18 = sadd.s32 1, %s1277_s24  }
  0x15   : > { %p1007_p10 = pnand %p1006_p9, %p48_p1  ;;  %s224_s17 = sshll.u32 %s1282_s16, 4  ;;  %s225_s17 = int_to_ptr.vmem [resolvable:$true] %s224_s17 }
  0x16   : > { %s205_s7 = sshll.u32 %s1650_s1, 4  ;;  %s34_s19 = sadd.s32 1, %s1273_s23  ;;  %s206_s7 = int_to_ptr.hbm [resolvable:$true] %s205_s7 }
  0x17   : > { %1009 = dma.hbm_to_vmem [thread:$0]  (!%p1007_p10), %s206_s7, 256, %s208_s10, [#allocation6], %s1644_s14, %s1644_s14, %s1645_s15  }
  0x18   : > { %s222_s13 = sshll.u32 %s1652_s3, 4  ;;  %s31_s20 = ssub.s32 %s1277_s24, %s1385_s18  ;;  %s223_s13 = int_to_ptr.hbm [resolvable:$true] %s222_s13 }
  0x19   : > { %1012 = dma.hbm_to_vmem [thread:$0]  (!%p1007_p10), %s223_s13, 256, %s225_s17, [#allocation6], %s1644_s14, %s1644_s14, %s1645_s15  }
  0x1a   : > { %p41_p12 = scmp.ne.s32.totalorder %s1273_s23, %s1269_s22  ;;  %p32_p13 = scmp.eq.s32.totalorder %s31_s20, 0 }
  0x1b   : > { %p42_p0 = scmp.eq.s32.totalorder %s1277_s24, 0  ;;  %p1026_p5 = scmp.lt.s32.totalorder %s1277_s24, 2 }
  0x1c   : > { %p1395_p3 = por %p155_p2, %p41_p12  ;;  %s241_s30 = sand.u32 1, %s1273_s23  }
  0x1d   : > { %s1401_s29 = scalar_select %p32_p13, %s1273_s23, %s34_s19  }
  0x1e   : > { %p43_p7 = por %p42_p0, %p41_p12  ;;  %s989_s7 = smul.u32 12, %s241_s30 }
  0x1f   : > { %s990_s9 = smul.u32 12, %s1277_s24  ;;  %s242_s19 = scalar_lea.sflag [#allocation3], %s241_s30 }
  0x20   : > { %p1405_p9 = pnand %p1026_p5, %p43_p7  ;;  %s245_s16 = scalar_lea.vmem [#allocation2], %s989_s7 }
  0x21   : > { %s250_s13 = scalar_lea.hbm %s1637_s0, %s990_s9  ;;  %s253_s17 = sshll.u32 %s245_s16, 4  ;;  %s254_s17 = int_to_ptr.vmem [resolvable:$true] %s253_s17 }
  0x22   : > { %s251_s20 = sshll.u32 %s250_s13, 4  ;;  %p1149_p10 = pneg %p1405_p9  ;;  %s252_s20 = int_to_ptr.hbm [resolvable:$true] %s251_s20 }
  0x23   : > { %s1145_s14 = sshra.s32 %s252_s20, 4  ;;  %s1152_s11 = scalar_lea.hbm %s1637_s0, 24  ;;  %s1146_s14 = int_to_ptr.hbm [resolvable:$true] %s1145_s14 }
  0x24   : > { %s1147_s15 = scalar_lea.hbm %s1146_s14, 12  ;;  %p1153_p0 = scmp.lt.s32.totalorder %s1146_s14, %s1637_s0 }
  0x25   : > { %p1148_p2 = scmp.ne.s32.totalorder %s1146_s14, %s1147_s15  ;;  %p1154_p5 = scmp.lt.s32.totalorder %s1152_s11, %s1147_s15 }
  0x27   : > { %p1150_p12 = pnand %p1149_p10, %p1148_p2  ;;  %p1155_p7 = por %p1154_p5, %p1153_p0 }
  0x29   : > { %p1151_p13 = pneg %p1150_p12 }
  0x2b   : > { %p1156_p11 = pnand %p1155_p7, %p1151_p13 }
  0x2d   : > { %1159 = shalt.err (!%p1156_p11)
}
  0x2e   : > { %s1655_s30 = smov 4   ;;  %s1656_s7 = smov 64  }
  0x2f   : > { %1016 = dma.hbm_to_vmem [thread:$0]  (!%p1405_p9), %s252_s20, 192, %s254_s17, %s242_s19, %s1656_s7, %s1656_s7, %s1655_s30  }
  0x30   : > { %265 = sbr.rel (%p1366_p8) target bundleno = 1073 (0x431), region = 40  ;;  %s1428_s1 = sand.u32 (!%p1366_p8), 1, %s1269_s22  }
  0x31   : > { %s991_s3 = smul.u32 (!%p1366_p8), 12, %s1428_s1  ;;  %s268_s14 = scalar_lea.sflag (!%p1366_p8), [#allocation3], %s1428_s1 }
  0x33   : > { %s1432_s15 = scalar_lea.vmem (!%p1366_p8), [#allocation2], %s991_s3 }
  0x35   : > { %1248 = dma.done.wait (%p1353_p4), %s268_s14, 192  }
  0x36   : > { %1250 = vsyncadd (%p1353_p4), %s268_s14, 4294967104 }
  0x37   : > { %1252 = dma.done.wait (%p48_p1), [#allocation6], 512  }
  0x38   : > { %1254 = vsyncadd (%p48_p1), [#allocation6], 4294966784  ;;  %v982_v0 = vld [vmem:[#allocation5 + $0x8] sm:$0xff]  ;;  %v981_v1 = vld [vmem:[#allocation5] sm:$0xff]  ;;  %vm353_vm0 = vcmask 261120   ;;  %vm498_vm1 = vcmask 64512  }
  0x39   : > { %366 = vmatpush.bf16.msra.mxu0 %v982_v0  ;;  %v1443_v2 = vld [vmem:[%s1432_s15] sm:$0xff]   ;;  %v329_v3 = vld [vmem:[%s1432_s15 + $0x8] sm:$0xf]  ;;  %vm467_vm2 = vcmask 130048   ;;  %vm531_vm3 = vcmask 1043456   ;;  %vm550_vm4 = vcmask 1047556  }
  0x3a   : > { %v1448_v4 = vunpack.c.l.b16 %v329_v3  ;;  %v984_v6 = vld [vmem:[#allocation7 + $0x8] sm:$0xff]  ;;  %v983_v7 = vld [vmem:[#allocation7] sm:$0xff]  ;;  %v1071_v9 = vld [vmem:[%s1639_s2] ss:$0 sm:$0xff]  ;;  %v988_v62 = vunpack.c.h.b16 %v1443_v2  ;;  %s1285_s16 = smov 32   ;;  %s1286_s17 = smov 64  }
  0x3b   : > { %410 = vmatpush.bf16.msra.mxu1 %v984_v6  ;;  %v1072_v21 = vld [vmem:[%s1641_s4] ss:$0 sm:$0xff]  ;;  %s1287_s20 = smov 96   ;;  %vm613_vm5 = vcmask 523264   ;;  %s950_s19 = sshll.u32 %s1428_s1, 2  ;;  %vm615_vm6 = vcmask 785408  }
  0x3c   : > { %v340_v5 = vpack.c.b16 %v1448_v4, %v1448_v4  ;;  %v428_v63 = vld [vmem:[%s1432_s15] sm:$0xf]  ;;  %v480_v0 = vpack.c.b16 %v1448_v4, %v988_v62  ;;  %s978_s11 = sshll.u32 %s1344_s25, 2  ;;  %s949_s12 = sshll.u32 %s1428_s1, 1  ;;  %vm623_vm7 = vcmask 1040384   ;;  %vm775_vm8 = vcmask 1042434  }
  0x3d   : > { %367 = vmatpush.bf16.msra.mxu0 %v981_v1  ;;  %v533_v1 = vsel %vm531_vm3, %v428_v63, 0  ;;  %s977_s9 = sshll.u32 %s1344_s25, 1  ;;  %s1564_s3 = scalar_lea.hbm %s1643_s6, %s978_s11  ;;  %vm777_vm9 = vcmask 1041408  }
  0x3e   : > { %s1573_s15 = scalar_lea.hbm %s1642_s5, %s977_s9  ;;  %s315_s27 = scalar_lea.vmem [#allocation9], %s950_s19 }
  0x3f   : > { %411 = vmatpush.bf16.msra.mxu1 %v983_v7  ;;  %s815_s8 = sshll.u32 %s315_s27, 4  ;;  %s817_s10 = sshll.u32 %s1564_s3, 4  ;;  %s816_s8 = int_to_ptr.vmem [resolvable:$true] %s815_s8  ;;  %s818_s10 = int_to_ptr.hbm [resolvable:$true] %s817_s10 }
  0x40   : > { %959 = vmatmul.msk.bf16.vlgmr.msra.gmra.mxu0 %vm353_vm0, %v1443_v2  ;;  %s308_s13 = scalar_lea.vmem [#allocation8], %s949_s12  ;;  %s1189_s19 = sshra.s32 %s818_s10, 4  ;;  %s1190_s19 = int_to_ptr.hbm [resolvable:$true] %s1189_s19 }
  0x41   : > { %s1191_s11 = scalar_lea.hbm %s1190_s19, 4  ;;  %s1195_s30 = scalar_lea.hbm %s1643_s6, 8 }
  0x42   : > { %p1192_p1 = scmp.ne.s32.totalorder %s1190_s19, %s1191_s11  ;;  %p1196_p11 = scmp.lt.s32.totalorder %s1190_s19, %s1643_s6 }
  0x43   : > { %p1197_p9 = scmp.lt.s32.totalorder %s1195_s30, %s1191_s11 }
  0x44   : > { %p1193_p4 = pnand %p1192_p1, %p1395_p3 }
  0x45   : > { %p1198_p2 = por %p1197_p9, %p1196_p11 }
  0x46   : > { %p1194_p8 = pneg %p1193_p4 }
  0x48   : > { %p1199_p10 = pnand %p1198_p2, %p1194_p8 }
  0x50   : > { %960 = vmatmul.msk.bf16.gmra.mxu0 %vm353_vm0, %v340_v5 }
  0xbd   : > { %v369_v8 = vpop.f32.mrf.mxu0 }
  0xbe   : > { %v370_v10 = vadd.f32 %v1071_v9, %v369_v8 }
  0xc0   : > { %v378_v13 = vmax.f32 %v370_v10, 0.0 }
  0xc5   : > { %v371_v11 = vpop.f32.mrf.mxu0 }
  0xc6   : > { %v372_v12 = vadd.f32 %v1071_v9, %v371_v11 }
  0xc8   : > { %v379_v14 = vmax.f32 %v372_v12, 0.0 }
  0xca   : > { %v381_v15 = vpack.c.bf16 %v379_v14, %v378_v13 }
  0xcc   : > { %969 = vmatmul.msk.bf16.vlgmr.msra.gmra.mxu1 %vm353_vm0, %v381_v15 }
  0xcd   : > { %v374_v16 = vpop.f32.mrf.mxu0 }
  0xce   : > { %v375_v17 = vadd.f32 %v1071_v9, %v374_v16 }
  0xd0   : > { %v380_v18 = vmax.f32 %v375_v17, 0.0  ;;  %v1283_v17 = vmov 1983009808  }
  0xd2   : > { %v382_v20 = vpack.c.bf16 %v380_v18, %v380_v18  ;;  %v553_v18 = vunpack.c.l.s4 %v1283_v17 }
  0xd5   : > { %v376_v19 = vpop.f32.mrf.mxu0 }
  0xd6   : > { %v1284_v19 = vmov 1934713408  }
  0xdc   : > { %970 = vmatmul.msk.bf16.gmra.mxu1 %vm353_vm0, %v382_v20  ;;  %v563_v20 = vunpack.c.l.s4 %v1284_v19 }
 0x149   : > { %v413_v22 = vpop.f32.mrf.mxu1 }
 0x14a   : > { %v414_v23 = vadd.f32 %v1072_v21, %v413_v22  ;;  %v554_v22 = vunpack.c.0.s8 %v553_v18 }
 0x14c   : > { %v422_v24 = vmax.f32 %v414_v23, 0.0 }
 0x14e   : > { %v425_v25 = vpack.c.bf16 %v422_v24, %v422_v24  ;;  %v1476_v24 = vunpack.c.0.s8 %v563_v20 }
 0x150   : > { %v435_v26 = vsel %vm353_vm0, %v425_v25, 0 }
 0x151   : > { %v415_v27 = vpop.f32.mrf.mxu1  ;;  %460 = vmatpush.bf16.xpose.msra.mxu3 %v435_v26 }
 0x152   : > { %v416_v28 = vadd.f32 %v1072_v21, %v415_v27 }
 0x154   : > { %v423_v29 = vmax.f32 %v416_v28, 0.0 }
 0x156   : > { %v426_v32 = vpack.c.bf16 %v423_v29, %v423_v29 }
 0x158   : > { %v431_v35 = vunpack.c.l.b16 %v426_v32 }
 0x159   : > { %v418_v30 = vpop.f32.mrf.mxu1  ;;  %542 = vmatpush.bf16.msrb.mxu3 %v533_v1 }
 0x15a   : > { %v419_v31 = vadd.f32 %v1072_v21, %v418_v30 }
 0x15c   : > { %v424_v33 = vmax.f32 %v419_v31, 0.0 }
 0x15e   : > { %v427_v34 = vpack.c.bf16 %v424_v33, %v424_v33 }
 0x160   : > { %v432_v36 = vunpack.c.l.b16 %v427_v34 }
 0x161   : > { %v420_v37 = vpop.f32.mrf.mxu1 }
 0x162   : > { %v433_v38 = vpack.c.b16 %v432_v36, %v431_v35 }
 0x164   : > { %972 = vmatmul.msk.bf16.vlgmr.msra.gmra.mxu3 %vm353_vm0, %v433_v38  ;;  %v438_v39 = vsel %vm353_vm0, %v433_v38, 0 }
 0x165   : > { %447 = vmatpush.bf16.xpose.msra.mxu2 %v438_v39 }
 0x16c   : > { %971 = vmatmul.msk.bf16.vlgmr.msra.gmra.mxu2 %vm353_vm0, %v425_v25 }
 0x16d   : > { %492 = vmatpush.bf16.msrb.mxu2 %v480_v0 }
 0x1e7   : > { %v462_v40 = vpop.f32.mrf.mxu3 }
 0x1e8   : > { %v499_v41 = vsel %vm498_vm1, %v462_v40, -inf }
 0x1e9   : > { %500 = vmax.xlane.f32.xlu0 %v499_v41 }
 0x1ef   : > { %v449_v42 = vpop.f32.mrf.mxu2  ;;  %v464_v43 = vpop.f32.mrf.mxu3 }
 0x1f0   : > { %v468_v44 = vsel %vm467_vm2, %v449_v42, -inf  ;;  %v502_v45 = vsel %vm498_vm1, %v464_v43, -inf }
 0x1f1   : > { %469 = vmax.xlane.f32.xlu1 %v468_v44  ;;  %503 = vmax.xlane.f32.xlu0 %v502_v45 }
 0x1f7   : > { %v451_v46 = vpop.f32.mrf.mxu2 }
 0x25c   : > { %v501_v47 = vpop.xlane.xlu0 %500 }
 0x25d   : > { %v505_v48 = vsub.f32 %v462_v40, %v501_v47 }
 0x25f   : > { %v507_v49 = vmul.f32 1.442695, %v505_v48 }
 0x261   : > { %1073 = vpow2.f32 %v507_v49 }
 0x264   : > { %v504_v50 = vpop.xlane.xlu0 %503  ;;  %v470_v51 = vpop.xlane.xlu1 %469 }
 0x265   : > { %v506_v52 = vsub.f32 %v464_v43, %v504_v50  ;;  %v471_v55 = vsub.f32 %v449_v42, %v470_v51 }
 0x267   : > { %v1074_v53 = vpop.eup %1073  ;;  %v509_v54 = vmul.f32 1.442695, %v506_v52  ;;  %v472_v57 = vmul.f32 1.442695, %v471_v55 }
 0x268   : > { %v511_v56 = vsel %vm498_vm1, %v1074_v53, 0.0 }
 0x269   : > { %512 = vadd.xlane.f32.xlu1 %v511_v56  ;;  %1075 = vpow2.f32 %v509_v54 }
 0x26a   : > { %1077 = vpow2.f32 %v472_v57 }
 0x26f   : > { %v1076_v58 = vpop.eup %1075 }
 0x270   : > { %v514_v59 = vsel %vm498_vm1, %v1076_v58, 0.0  ;;  %v1078_v60 = vpop.eup %1077 }
 0x271   : > { %515 = vadd.xlane.f32.xlu2 %v514_v59  ;;  %v474_v61 = vsel %vm467_vm2, %v1078_v60, 0.0 }
 0x279   : > { %475 = vadd.xlane.f32.xlu2 %v474_v61 }
 0x2dc   : > { %v513_v3 = vpop.xlane.xlu1 %512 }
 0x2dd   : > { %1079 = vrcp.f32 %v513_v3 }
 0x2e3   : > { %v1080_v6 = vpop.eup %1079 }
 0x2e4   : > { %v516_v5 = vpop.xlane.xlu2 %515  ;;  %v519_v7 = vmul.f32 %v1080_v6, %v1074_v53 }
 0x2e5   : > { %1081 = vrcp.f32 %v516_v5 }
 0x2e6   : > { %v521_v9 = vpack.c.bf16 %v519_v7, %v519_v7 }
 0x2e8   : > { %v525_v2 = vunpack.c.l.b16 %v521_v9 }
 0x2eb   : > { %v1082_v8 = vpop.eup %1081 }
 0x2ec   : > { %v520_v10 = vmul.f32 %v1082_v8, %v1076_v58  ;;  %v476_v11 = vpop.xlane.xlu2 %475 }
 0x2ed   : > { %1083 = vrcp.f32 %v476_v11 }
 0x2ee   : > { %v522_v12 = vpack.c.bf16 %v520_v10, %v520_v10 }
 0x2f0   : > { %v526_v13 = vunpack.c.l.b16 %v522_v12 }
 0x2f2   : > { %v527_v14 = vpack.c.b16 %v526_v13, %v525_v2 }
 0x2f3   : > { %v1084_v15 = vpop.eup %1083 }
 0x2f4   : > { %v478_v4 = vmul.f32 %v1084_v15, %v1078_v60  ;;  %974 = vmatmul.msk.bf16.vlgmr.msrb.gmra.mxu3 %vm498_vm1, %v527_v14 }
 0x2f6   : > { %v479_v16 = vpack.c.bf16 %v478_v4, %v478_v4 }
 0x2f8   : > { %973 = vmatmul.msk.bf16.vlgmr.msrb.gmra.mxu2 %vm467_vm2, %v479_v16 }
 0x377   : > { %v544_v21 = vpop.f32.mrf.mxu3 }
 0x378   : > { %v1478_v27 = vperm.slane %v544_v21, %v554_v22  ;;  %v631_v31 = vrot.slane %v544_v21, 4 }
 0x37a   : > { %v1489_v36 = vperm.slane %v1478_v27, %v1476_v24  ;;  %v632_v39 = vsel %vm550_vm4, 0.0, %v631_v31  ;;  %v641_v2 = vrot.slane %v1478_v27, 4 }
 0x37b   : > { %v494_v23 = vpop.f32.mrf.mxu2  ;;  %v640_v45 = vperm.slane %v632_v39, %v554_v22 }
 0x37c   : > { %v549_v25 = vrot.slane %v494_v23, 4  ;;  %v555_v26 = vperm.slane %v494_v23, %v554_v22  ;;  %v661_v47 = vrot.slane %v1489_v36, 4  ;;  %v642_v15 = vsel %vm550_vm4, 0.0, %v641_v2 }
 0x37d   : > { %v1506_v54 = vperm.slane %v640_v45, %v1476_v24  ;;  %v651_v55 = vrot.slane %v640_v45, 4  ;;  %v650_v17 = vperm.slane %v642_v15, %v1476_v24 }
 0x37e   : > { %v551_v28 = vsel %vm550_vm4, 0.0, %v549_v25  ;;  %v560_v29 = vrot.slane %v555_v26, 4  ;;  %v1482_v30 = vperm.slane %v555_v26, %v1476_v24  ;;  %v662_v52 = vsel %vm550_vm4, 0.0, %v661_v47 }
 0x37f   : > { %v559_v32 = vperm.slane %v551_v28, %v554_v22  ;;  %v546_v40 = vpop.f32.mrf.mxu3  ;;  %v665_v60 = vrot.slane %v1506_v54, 4  ;;  %v652_v61 = vsel %vm550_vm4, 0.0, %v651_v55  ;;  %v663_v19 = vrot.slane %v650_v17, 4 }
 0x380   : > { %v580_v33 = vrot.slane %v1482_v30, 4  ;;  %v561_v34 = vsel %vm550_vm4, 0.0, %v560_v29  ;;  %v674_v46 = vperm.slane %v546_v40, %v554_v22  ;;  %v669_v49 = vrot.slane %v546_v40, 4 }
 0x381   : > { %v569_v35 = vperm.slane %v561_v34, %v1476_v24  ;;  %v1493_v38 = vperm.slane %v559_v32, %v1476_v24  ;;  %v570_v43 = vrot.slane %v559_v32, 4  ;;  %v666_v0 = vsel %vm550_vm4, 0.0, %v665_v60 }
 0x382   : > { %v581_v37 = vsel %vm550_vm4, 0.0, %v580_v33  ;;  %v679_v51 = vrot.slane %v674_v46, 4  ;;  %v670_v56 = vsel %vm550_vm4, 0.0, %v669_v49  ;;  %v660_v1 = vperm.slane %v652_v61, %v1476_v24 }
 0x383   : > { %589 = vrot.lane.b32.xlu0 %v581_v37, %s1285_s16  ;;  %593 = vrot.lane.b32.xlu1 %v569_v35, %s1286_s17  ;;  %v496_v41 = vpop.f32.mrf.mxu2  ;;  %v582_v42 = vrot.slane %v569_v35, 4  ;;  %v584_v48 = vrot.slane %v1493_v38, 4  ;;  %v571_v50 = vsel %vm550_vm4, 0.0, %v570_v43  ;;  %v678_v58 = vperm.slane %v670_v56, %v554_v22 }
 0x384   : > { %v579_v57 = vperm.slane %v571_v50, %v1476_v24  ;;  %v680_v59 = vsel %vm550_vm4, 0.0, %v679_v51  ;;  %v684_v5 = vperm.slane %v674_v46, %v1476_v24  ;;  %v667_v7 = vrot.slane %v660_v1, 4 }
 0x385   : > { %v583_v44 = vsel %vm550_vm4, 0.0, %v582_v42  ;;  %v585_v53 = vsel %vm550_vm4, 0.0, %v584_v48  ;;  %v688_v62 = vperm.slane %v680_v59, %v1476_v24  ;;  %v694_v63 = vperm.slane %v678_v58, %v1476_v24 }
 0x386   : > { %597 = vrot.lane.b32.xlu2 %v583_v44, %s1287_s20  ;;  %v689_v3 = vrot.slane %v678_v58, 4  ;;  %v699_v9 = vrot.slane %v684_v5, 4  ;;  %v668_v11 = vsel %vm550_vm4, 0.0, %v667_v7  ;;  %v586_v20 = vrot.slane %v579_v57, 4 }
 0x387   : > { %v703_v6 = vrot.slane %v694_v63, 4  ;;  %v701_v4 = vrot.slane %v688_v62, 4  ;;  %v664_v21 = vsel %vm550_vm4, 0.0, %v663_v19 }
 0x388   : > { %v690_v8 = vsel %vm550_vm4, 0.0, %v689_v3  ;;  %v700_v13 = vsel %vm550_vm4, 0.0, %v699_v9  ;;  %v587_v22 = vsel %vm550_vm4, 0.0, %v586_v20 }
 0x389   : > { %v704_v10 = vsel %vm550_vm4, 0.0, %v703_v6  ;;  %v698_v12 = vperm.slane %v690_v8, %v1476_v24  ;;  %v702_v18 = vsel %vm550_vm4, 0.0, %v701_v4 }
 0x38b   : > { %708 = vrot.lane.b32.xlu1 %v662_v52, %s1285_s16  ;;  %601 = vrot.lane.b32.xlu0 %v585_v53, %s1285_s16  ;;  %v705_v14 = vrot.slane %v698_v12, 4  ;;  %v626_v53 = vlaneseq }
 0x38d   : > { %v706_v16 = vsel %vm550_vm4, 0.0, %v705_v14  ;;  %vm780_vm10 = vcmp.lt.s32.totalorder %v626_v53, 512  ;;  %vm628_vm11 = vcmp.lt.s32.totalorder %v626_v53, 256 }
 0x38e   : > { %605 = vrot.lane.b32.xlu2 %v579_v57, %s1286_s17 }
 0x393   : > { %736 = vrot.lane.b32.xlu1 %v688_v62, %s1286_s17  ;;  %720 = vrot.lane.b32.xlu0 %v666_v0, %s1285_s16 }
 0x396   : > { %724 = vrot.lane.b32.xlu2 %v660_v1, %s1286_s17 }
 0x39b   : > { %744 = vrot.lane.b32.xlu1 %v704_v10, %s1285_s16  ;;  %728 = vrot.lane.b32.xlu0 %v668_v11, %s1287_s20 }
 0x39e   : > { %732 = vrot.lane.b32.xlu2 %v700_v13, %s1285_s16  ;;  %s801_s16 = sshll.u32 %s308_s13, 4  ;;  %s1589_s16 = int_to_ptr.vmem [resolvable:$true] %s801_s16 }
 0x3a3   : > { %752 = vrot.lane.b32.xlu1 %v706_v16, %s1287_s20  ;;  %748 = vrot.lane.b32.xlu0 %v698_v12, %s1286_s17 }
 0x3a6   : > { %740 = vrot.lane.b32.xlu2 %v702_v18, %s1287_s20 }
 0x3ab   : > { %716 = vrot.lane.b32.xlu1 %v664_v21, %s1287_s20  ;;  %609 = vrot.lane.b32.xlu0 %v587_v22, %s1287_s20  ;;  %s789_s20 = scalar_lea.sflag [#allocation10], %s1428_s1 }
 0x3ae   : > { %712 = vrot.lane.b32.xlu2 %v650_v17, %s1286_s17  ;;  %s803_s17 = sshll.u32 %s1573_s15, 4  ;;  %s1591_s17 = int_to_ptr.hbm [resolvable:$true] %s803_s17 }
 0x3e0   : > { %v1545_v23 = vpop.permute.xlu2 %597 }
 0x3e8   : > { %v606_v24 = vpop.permute.xlu2 %605 }
 0x3f0   : > { %v725_v27 = vpop.permute.xlu2 %724 }
 0x3f5   : > { %v590_v25 = vpop.permute.xlu0 %589  ;;  %v594_v26 = vpop.permute.xlu1 %593 }
 0x3f6   : > { %v612_v46 = vsel %vm353_vm0, %v1482_v30, %v590_v25 }
 0x3f7   : > { %v614_v30 = vsel %vm613_vm5, %v612_v46, %v594_v26 }
 0x3f8   : > { %v733_v33 = vpop.permute.xlu2 %732  ;;  %v616_v1 = vsel %vm615_vm6, %v614_v30, %v1545_v23 }
 0x3f9   : > { %v761_v42 = vsel %vm353_vm0, %v684_v5, %v733_v33 }
 0x3fd   : > { %v709_v28 = vpop.permute.xlu1 %708  ;;  %v602_v29 = vpop.permute.xlu0 %601 }
 0x3fe   : > { %v617_v49 = vsel %vm353_vm0, %v1493_v38, %v602_v29  ;;  %v755_v55 = vsel %vm353_vm0, %v1489_v36, %v709_v28 }
 0x3ff   : > { %v618_v59 = vsel %vm613_vm5, %v617_v49, %v606_v24 }
 0x400   : > { %v741_v37 = vpop.permute.xlu2 %740 }
 0x405   : > { %v737_v31 = vpop.permute.xlu1 %736  ;;  %v721_v32 = vpop.permute.xlu0 %720 }
 0x406   : > { %v758_v43 = vsel %vm353_vm0, %v1506_v54, %v721_v32  ;;  %v762_v45 = vsel %vm613_vm5, %v761_v42, %v737_v31 }
 0x407   : > { %v759_v48 = vsel %vm613_vm5, %v758_v43, %v725_v27  ;;  %v763_v50 = vsel %vm615_vm6, %v762_v45, %v741_v37 }
 0x408   : > { %v713_v51 = vpop.permute.xlu2 %712  ;;  %v772_v38 = vrot.slane %v763_v50, 6 }
 0x409   : > { %v756_v56 = vsel %vm613_vm5, %v755_v55, %v713_v51 }
 0x40d   : > { %v745_v34 = vpop.permute.xlu1 %744  ;;  %v729_v35 = vpop.permute.xlu0 %728 }
 0x40e   : > { %v764_v39 = vsel %vm353_vm0, %v694_v63, %v745_v34  ;;  %v760_v52 = vsel %vm615_vm6, %v759_v48, %v729_v35 }
 0x40f   : > { %v771_v57 = vrot.slane %v760_v52, 7 }
 0x415   : > { %v753_v40 = vpop.permute.xlu1 %752  ;;  %v749_v41 = vpop.permute.xlu0 %748 }
 0x416   : > { %v765_v44 = vsel %vm613_vm5, %v764_v39, %v749_v41 }
 0x417   : > { %v766_v47 = vsel %vm615_vm6, %v765_v44, %v753_v40 }
 0x418   : > { %v773_v54 = vrot.slane %v766_v47, 5 }
 0x41a   : > { %v776_v63 = vsel %vm775_vm8, %v772_v38, %v773_v54 }
 0x41d   : > { %v717_v58 = vpop.permute.xlu1 %716  ;;  %v610_v60 = vpop.permute.xlu0 %609 }
 0x41e   : > { %v757_v61 = vsel %vm615_vm6, %v756_v56, %v717_v58  ;;  %v619_v36 = vsel %vm615_vm6, %v618_v59, %v610_v60 }
 0x41f   : > { %v774_v62 = vsel %vm623_vm7, %v757_v61, %v771_v57  ;;  %v622_v0 = vrot.slane %v619_v36, 7 }
 0x420   : > { %v778_v3 = vsel %vm777_vm9, %v774_v62, %v776_v63 }
 0x421   : > { %v624_v5 = vsel %vm623_vm7, %v616_v1, %v622_v0  ;;  %782 = vst.msk [vmem:[%s315_s27] sm:$0xf] %vm780_vm10, %v778_v3 }
 0x422   : > { %630 = vst.msk [vmem:[%s308_s13] sm:$0x3] %vm628_vm11, %v624_v5 }
 0x423   : > { %1202 = shalt.err (!%p1199_p10)
}
 0x424   : > { %1003 = dma.vmem_to_hbm [thread:$0]  (%p1395_p3), %s816_s8, 64, %s818_s10, %s789_s20  }
 0x425   : > { %s784_s25 = scalar_lea.sflag [#allocation4], %s1428_s1  ;;  %s1217_s14 = sshra.s32 %s1591_s17, 4  ;;  %s1218_s14 = int_to_ptr.hbm [resolvable:$true] %s1217_s14 }
 0x426   : > { %s1219_s15 = scalar_lea.hbm %s1218_s14, 2  ;;  %s1223_s19 = scalar_lea.hbm %s1642_s5, 4 }
 0x427   : > { %p1220_p12 = scmp.ne.s32.totalorder %s1218_s14, %s1219_s15  ;;  %p1224_p5 = scmp.lt.s32.totalorder %s1218_s14, %s1642_s5 }
 0x428   : > { %p1225_p7 = scmp.lt.s32.totalorder %s1223_s19, %s1219_s15 }
 0x429   : > { %p1221_p13 = pnand %p1220_p12, %p1395_p3 }
 0x42a   : > { %p1226_p1 = por %p1225_p7, %p1224_p5 }
 0x42b   : > { %p1222_p0 = pneg %p1221_p13 }
 0x42d   : > { %p1227_p4 = pnand %p1226_p1, %p1222_p0 }
 0x42f   : > { %1230 = shalt.err (!%p1227_p4)
}
 0x430   : > { %1002 = dma.vmem_to_hbm [thread:$0]  (%p1395_p3), %s1589_s16, 32, %s1591_s17, %s784_s25  }
 0x431 PF: > { %s829_s1 = sand.u32 1, %s1265_s21   ;;  %p1657_p8 = scmp.ge.s32.totalorder %s1277_s24, 2 }
 0x432   : > { %s830_s8 = scalar_lea.sflag [#allocation4], %s829_s1 }
 0x433   : > { %p1018_p11 = pnand %p1657_p8, %p1358_p6 }
 0x435   : > { %p1019_p9 = pneg %p1018_p11 }
 0x437   : > { %1256 = dma.done.wait (%p1019_p9), %s830_s8, 32  }
 0x438   : > { %1258 = vsyncadd (%p1019_p9), %s830_s8, 4294967264  ;;  %s840_s10 = scalar_lea.sflag [#allocation10], %s829_s1 }
 0x439   : > { %1260 = dma.done.wait (%p1019_p9), %s840_s10, 64  }
 0x43a   : > { %1262 = vsyncadd (%p1019_p9), %s840_s10, 4294967232  ;;  %p24_p3 = scmp.ge.s32.totalorder %s1385_s18, 4   ;;  %s1658_s21 = smov %s1269_s22 }
 0x43b   : > { %s1659_s22 = smov %s1273_s23  ;;  %s1660_s23 = smov %s1401_s29 }
 0x43c   : > { %s1661_s24 = smov %s1385_s18  ;;  %26 = sbr.rel (!%p24_p3) target bundleno = 11 (0xb), region = 110 }
 0x441   :  { %846 = vsyncpa [#allocation3], 1 }
 0x442   :  { %848 = vsyncpa [#allocation3 + $0x1], 1 }
 0x443   :  { %849 = vsyncpa [#allocation6], 1 }
 0x444   :  { %850 = vsyncpa [#allocation4], 1 }
 0x445   :  { %852 = vsyncpa [#allocation4 + $0x1], 1 }
 0x446   :  { %853 = vsyncpa [#allocation10], 1 }
 0x447   :  { %855 = vsyncpa [#allocation10 + $0x1], 1 }

</bundles_post_ra>
